<compile_context>
chip_gen: v5e
topology: v5e:2x2
jax: 0.10.0
libtpu: 0.0.40
codegen_flags: <defaults>
</compile_context>

<pallas_src>
import math
import numpy as np
import jax
import jax.numpy as jnp
from jax.experimental import pallas as pl
from jax.experimental.pallas import tpu as pltpu

LANES = 128      # hidden feature dims padded to full lane width
TM_CAP = 2048    # max rows per grid step (VMEM headroom incl. v7x 64 MiB part)


def _round_up(x, m):
    return ((x + m - 1) // m) * m


def _choose_tm(rows, cap=TM_CAP, align=128):
    """Row-tile: big enough to amortize per-step overhead, small enough to
    keep >=2 grid steps (v7x megacore) and stay comfortably inside VMEM."""
    half = max(1, (rows + 1) // 2)
    return max(align, min(cap, _round_up(half, align)))


# ----------------------------------------------------------------------------
# Pallas kernel: fused MLP on one (TM, in_chan) row tile.
# refs = (x_ref, w1, b1, w2, b2, ..., wL, bL, out_ref)
# ----------------------------------------------------------------------------
def fcn_kernel(*refs):
    x_ref, out_ref = refs[0], refs[-1]
    wb = refs[1:-1]
    n_layers = len(wb) // 2
    out_chan = out_ref.shape[-1]

    h = x_ref[...]
    for i in range(n_layers):
        w = wb[2 * i][...]                              # bf16 (K, 128)
        b = wb[2 * i + 1][...].astype(jnp.float32)      # (1, 128)
        # DEFAULT precision: single bf16 MXU pass with f32 accumulation.
        acc = jnp.dot(h, w, preferred_element_type=jnp.float32) + b
        if i < n_layers - 1:
            # ReLU; keep inter-layer activations in bf16 (halves vreg/VMEM use,
            # matches what the MXU would see under DEFAULT precision anyway).
            h = jnp.maximum(acc, 0.0).astype(jnp.bfloat16)
        else:
            h = acc
    out_ref[...] = h[:, :out_chan].astype(out_ref.dtype)


# ----------------------------------------------------------------------------
# Parameter construction (PyTorch Linear convention: W is (out, in)).
# ----------------------------------------------------------------------------
def make_params(key, depth=5, in_chan=8, out_chan=2, inter_chan=64):
    layers = []
    if depth == 1:
        layers.append((in_chan, out_chan, False))
    else:
        layers.append((in_chan, inter_chan, True))
        for _ in range(depth - 1):
            layers.append((inter_chan, inter_chan, True))
        layers.append((inter_chan, out_chan, True))

    keys = jax.random.split(key, 2 * len(layers))
    params = []
    for li, (cin, cout, has_bias) in enumerate(layers):
        w = jax.random.normal(keys[2 * li], (cout, cin), jnp.float32) / math.sqrt(cin)
        if has_bias:
            b = 0.05 * jax.random.normal(keys[2 * li + 1], (cout,), jnp.float32)
        else:
            b = jnp.zeros((cout,), jnp.float32)
        params.append((w, b))
    return params


def pack_params(params, lanes=LANES):
    """PyTorch (out,in) weights -> bf16 (K, lanes) matrices for `h @ W`.
    Layer 0 keeps K = in_chan (the narrow input is NOT lane-padded in HBM);
    deeper layers are zero-padded to (lanes, lanes); biases become (1, lanes).
    Zero pad lanes stay exactly zero through zero bias + ReLU."""
    packed = []
    for li, (w, b) in enumerate(params):
        cout, cin = w.shape
        assert cin <= lanes and cout <= lanes, \
            "inter_chan > 128 would need an in-kernel K/N tiling loop"
        k = cin if li == 0 else lanes
        wp = jnp.zeros((k, lanes), jnp.float32).at[:cin, :cout].set(w.T)
        bp = jnp.zeros((1, lanes), jnp.float32).at[0, :cout].set(b)
        packed += [wp.astype(jnp.bfloat16), bp.astype(jnp.bfloat16)]
    return packed


# ----------------------------------------------------------------------------
# Wrapper: (..., in_chan) in / (..., out_chan) out.
# ----------------------------------------------------------------------------
def fcn_forward(x, params, *, lanes=LANES):
    orig_lead = x.shape[:-1]
    in_chan = x.shape[-1]
    out_chan = params[-1][0].shape[0]

    rows = int(np.prod(orig_lead)) if orig_lead else 1
    tm = _choose_tm(rows)
    rows_p = _round_up(rows, tm)

    x2 = jnp.reshape(x, (rows, in_chan)).astype(jnp.float32)
    if rows_p != rows:
        x2 = jnp.zeros((rows_p, in_chan), jnp.float32).at[:rows].set(x2)

    plist = pack_params(params, lanes)
    n_layers = len(plist) // 2

    # x block: last dim equals the full (narrow) array dim -> legal, unpadded.
    in_specs = [pl.BlockSpec((tm, in_chan), lambda i: (i, 0))]
    for p in plist:  # weights/biases: constant block index -> resident in VMEM
        in_specs.append(pl.BlockSpec(p.shape, lambda i, _nd=p.ndim: (0,) * _nd))
    out_spec = pl.BlockSpec((tm, out_chan), lambda i: (i, 0))

    flops = 2 * rows_p * sum(
        int(plist[2 * i].shape[0]) * int(plist[2 * i].shape[1])
        for i in range(n_layers))
    bytes_accessed = (x2.size * x2.dtype.itemsize
                      + sum(p.size * p.dtype.itemsize for p in plist)
                      + rows_p * out_chan * 4)

    out = pl.pallas_call(
        fcn_kernel,
        out_shape=jax.ShapeDtypeStruct((rows_p, out_chan), jnp.float32),
        grid_spec=pltpu.PrefetchScalarGridSpec(
            num_scalar_prefetch=0,
            grid=(rows_p // tm,),
            in_specs=in_specs,
            out_specs=out_spec,
        ),
        compiler_params=pltpu.CompilerParams(
            dimension_semantics=("parallel",)),
        cost_estimate=pl.CostEstimate(
            flops=flops, transcendentals=0, bytes_accessed=bytes_accessed),
    )(x2, *plist)

    out = out[:rows]
    return out.reshape(orig_lead + (out_chan,))


# ----------------------------------------------------------------------------
# Pure-JAX reference (same default matmul precision as the kernel).
# ----------------------------------------------------------------------------
def fcn_reference(x, params):
    h = x.astype(jnp.float32)
    n = len(params)
    for i, (w, b) in enumerate(params):
        h = jnp.dot(h, w.T, preferred_element_type=jnp.float32) + b
        if i < n - 1:
            h = jnp.maximum(h, 0.0)
    return h


if __name__ == "__main__":
    key = jax.random.PRNGKey(0)
    kx, kp = jax.random.split(key)

    B, S = 2, 128                      # batch=2, 128 tokens per batch
    DEPTH, IN_CHAN, OUT_CHAN, INTER = 5, 8, 2, 64

    x = jax.random.normal(kx, (B, S, IN_CHAN), jnp.float32)
    params = make_params(kp, DEPTH, IN_CHAN, OUT_CHAN, INTER)

    out = fcn_forward(x, params)
    out = jax.block_until_ready(out)

    ref = fcn_reference(x, params)
    assert out.shape == (B, S, OUT_CHAN)
    np.testing.assert_allclose(np.asarray(out), np.asarray(ref),
                               rtol=2e-2, atol=2e-2)
    print("KERNEL_OK")
</pallas_src>

<mosaic_0001>
module attributes {stable_mosaic.version = 11 : i64} {
  func.func @fcn_kernel(%arg0: i32, %arg1: memref<128x8xf32, #tpu.memory_space<vmem>>, %arg2: memref<8x128xbf16, #tpu.memory_space<vmem>>, %arg3: memref<1x128xbf16, #tpu.memory_space<vmem>>, %arg4: memref<128x128xbf16, #tpu.memory_space<vmem>>, %arg5: memref<1x128xbf16, #tpu.memory_space<vmem>>, %arg6: memref<128x128xbf16, #tpu.memory_space<vmem>>, %arg7: memref<1x128xbf16, #tpu.memory_space<vmem>>, %arg8: memref<128x128xbf16, #tpu.memory_space<vmem>>, %arg9: memref<1x128xbf16, #tpu.memory_space<vmem>>, %arg10: memref<128x128xbf16, #tpu.memory_space<vmem>>, %arg11: memref<1x128xbf16, #tpu.memory_space<vmem>>, %arg12: memref<128x128xbf16, #tpu.memory_space<vmem>>, %arg13: memref<1x128xbf16, #tpu.memory_space<vmem>>, %arg14: memref<128x2xf32, #tpu.memory_space<vmem>>) attributes {dimension_semantics = [#tpu.dimension_semantics<parallel>], iteration_bounds = array<i64: 2>, scalar_prefetch = 0 : i64, scratch_operands = 0 : i64, tpu.core_type = #tpu.core_type<tc>, window_params = [{transform_indices = @transform_0, window_bounds = array<i64: 128, 8>}, {pipeline_mode = #tpu.pipeline_mode<synchronous>, transform_indices = @transform_1, window_bounds = array<i64: 8, 128>}, {pipeline_mode = #tpu.pipeline_mode<synchronous>, transform_indices = @transform_2, window_bounds = array<i64: 1, 128>}, {pipeline_mode = #tpu.pipeline_mode<synchronous>, transform_indices = @transform_3, window_bounds = array<i64: 128, 128>}, {pipeline_mode = #tpu.pipeline_mode<synchronous>, transform_indices = @transform_4, window_bounds = array<i64: 1, 128>}, {pipeline_mode = #tpu.pipeline_mode<synchronous>, transform_indices = @transform_5, window_bounds = array<i64: 128, 128>}, {pipeline_mode = #tpu.pipeline_mode<synchronous>, transform_indices = @transform_6, window_bounds = array<i64: 1, 128>}, {pipeline_mode = #tpu.pipeline_mode<synchronous>, transform_indices = @transform_7, window_bounds = array<i64: 128, 128>}, {pipeline_mode = #tpu.pipeline_mode<synchronous>, transform_indices = @transform_8, window_bounds = array<i64: 1, 128>}, {pipeline_mode = #tpu.pipeline_mode<synchronous>, transform_indices = @transform_9, window_bounds = array<i64: 128, 128>}, {pipeline_mode = #tpu.pipeline_mode<synchronous>, transform_indices = @transform_10, window_bounds = array<i64: 1, 128>}, {pipeline_mode = #tpu.pipeline_mode<synchronous>, transform_indices = @transform_11, window_bounds = array<i64: 128, 128>}, {pipeline_mode = #tpu.pipeline_mode<synchronous>, transform_indices = @transform_12, window_bounds = array<i64: 1, 128>}, {transform_indices = @transform_13, window_bounds = array<i64: 128, 2>}]} {
    %c0 = arith.constant 0 : index
    %c0_0 = arith.constant 0 : index
    %0 = vector.load %arg1[%c0, %c0_0] : memref<128x8xf32, #tpu.memory_space<vmem>>, vector<128x8xf32>
    %c0_1 = arith.constant 0 : index
    %c0_2 = arith.constant 0 : index
    %1 = vector.load %arg2[%c0_1, %c0_2] : memref<8x128xbf16, #tpu.memory_space<vmem>>, vector<8x128xbf16>
    %c0_3 = arith.constant 0 : index
    %c0_4 = arith.constant 0 : index
    %2 = vector.load %arg3[%c0_3, %c0_4] : memref<1x128xbf16, #tpu.memory_space<vmem>>, vector<1x128xbf16>
    %3 = arith.extf %2 : vector<1x128xbf16> to vector<1x128xf32>
    %cst = arith.constant dense<0.000000e+00> : vector<128x128xf32>
    %4 = tpu.matmul %0, %1, %cst {dimension_numbers = #tpu.dot_dimension_numbers<[1], [0], [0], [1], [0, 0, 1, 1], [], []>} : vector<128x8xf32>, vector<8x128xbf16>, vector<128x128xf32> -> vector<128x128xf32>
    %5 = vector.broadcast %3 : vector<1x128xf32> to vector<128x128xf32>
    %6 = arith.addf %4, %5 : vector<128x128xf32>
    %cst_5 = arith.constant 0.000000e+00 : f32
    %7 = vector.broadcast %cst_5 : f32 to vector<128x128xf32>
    %8 = arith.maximumf %6, %7 : vector<128x128xf32>
    %9 = arith.truncf %8 : vector<128x128xf32> to vector<128x128xbf16>
    %c0_6 = arith.constant 0 : index
    %c0_7 = arith.constant 0 : index
    %10 = vector.load %arg4[%c0_6, %c0_7] : memref<128x128xbf16, #tpu.memory_space<vmem>>, vector<128x128xbf16>
    %c0_8 = arith.constant 0 : index
    %c0_9 = arith.constant 0 : index
    %11 = vector.load %arg5[%c0_8, %c0_9] : memref<1x128xbf16, #tpu.memory_space<vmem>>, vector<1x128xbf16>
    %12 = arith.extf %11 : vector<1x128xbf16> to vector<1x128xf32>
    %cst_10 = arith.constant dense<0.000000e+00> : vector<128x128xf32>
    %13 = tpu.matmul %9, %10, %cst_10 {dimension_numbers = #tpu.dot_dimension_numbers<[1], [0], [0], [1], [0, 0, 1, 1], [], []>} : vector<128x128xbf16>, vector<128x128xbf16>, vector<128x128xf32> -> vector<128x128xf32>
    %14 = vector.broadcast %12 : vector<1x128xf32> to vector<128x128xf32>
    %15 = arith.addf %13, %14 : vector<128x128xf32>
    %cst_11 = arith.constant 0.000000e+00 : f32
    %16 = vector.broadcast %cst_11 : f32 to vector<128x128xf32>
    %17 = arith.maximumf %15, %16 : vector<128x128xf32>
    %18 = arith.truncf %17 : vector<128x128xf32> to vector<128x128xbf16>
    %c0_12 = arith.constant 0 : index
    %c0_13 = arith.constant 0 : index
    %19 = vector.load %arg6[%c0_12, %c0_13] : memref<128x128xbf16, #tpu.memory_space<vmem>>, vector<128x128xbf16>
    %c0_14 = arith.constant 0 : index
    %c0_15 = arith.constant 0 : index
    %20 = vector.load %arg7[%c0_14, %c0_15] : memref<1x128xbf16, #tpu.memory_space<vmem>>, vector<1x128xbf16>
    %21 = arith.extf %20 : vector<1x128xbf16> to vector<1x128xf32>
    %cst_16 = arith.constant dense<0.000000e+00> : vector<128x128xf32>
    %22 = tpu.matmul %18, %19, %cst_16 {dimension_numbers = #tpu.dot_dimension_numbers<[1], [0], [0], [1], [0, 0, 1, 1], [], []>} : vector<128x128xbf16>, vector<128x128xbf16>, vector<128x128xf32> -> vector<128x128xf32>
    %23 = vector.broadcast %21 : vector<1x128xf32> to vector<128x128xf32>
    %24 = arith.addf %22, %23 : vector<128x128xf32>
    %cst_17 = arith.constant 0.000000e+00 : f32
    %25 = vector.broadcast %cst_17 : f32 to vector<128x128xf32>
    %26 = arith.maximumf %24, %25 : vector<128x128xf32>
    %27 = arith.truncf %26 : vector<128x128xf32> to vector<128x128xbf16>
    %c0_18 = arith.constant 0 : index
    %c0_19 = arith.constant 0 : index
    %28 = vector.load %arg8[%c0_18, %c0_19] : memref<128x128xbf16, #tpu.memory_space<vmem>>, vector<128x128xbf16>
    %c0_20 = arith.constant 0 : index
    %c0_21 = arith.constant 0 : index
    %29 = vector.load %arg9[%c0_20, %c0_21] : memref<1x128xbf16, #tpu.memory_space<vmem>>, vector<1x128xbf16>
    %30 = arith.extf %29 : vector<1x128xbf16> to vector<1x128xf32>
    %cst_22 = arith.constant dense<0.000000e+00> : vector<128x128xf32>
    %31 = tpu.matmul %27, %28, %cst_22 {dimension_numbers = #tpu.dot_dimension_numbers<[1], [0], [0], [1], [0, 0, 1, 1], [], []>} : vector<128x128xbf16>, vector<128x128xbf16>, vector<128x128xf32> -> vector<128x128xf32>
    %32 = vector.broadcast %30 : vector<1x128xf32> to vector<128x128xf32>
    %33 = arith.addf %31, %32 : vector<128x128xf32>
    %cst_23 = arith.constant 0.000000e+00 : f32
    %34 = vector.broadcast %cst_23 : f32 to vector<128x128xf32>
    %35 = arith.maximumf %33, %34 : vector<128x128xf32>
    %36 = arith.truncf %35 : vector<128x128xf32> to vector<128x128xbf16>
    %c0_24 = arith.constant 0 : index
    %c0_25 = arith.constant 0 : index
    %37 = vector.load %arg10[%c0_24, %c0_25] : memref<128x128xbf16, #tpu.memory_space<vmem>>, vector<128x128xbf16>
    %c0_26 = arith.constant 0 : index
    %c0_27 = arith.constant 0 : index
    %38 = vector.load %arg11[%c0_26, %c0_27] : memref<1x128xbf16, #tpu.memory_space<vmem>>, vector<1x128xbf16>
    %39 = arith.extf %38 : vector<1x128xbf16> to vector<1x128xf32>
    %cst_28 = arith.constant dense<0.000000e+00> : vector<128x128xf32>
    %40 = tpu.matmul %36, %37, %cst_28 {dimension_numbers = #tpu.dot_dimension_numbers<[1], [0], [0], [1], [0, 0, 1, 1], [], []>} : vector<128x128xbf16>, vector<128x128xbf16>, vector<128x128xf32> -> vector<128x128xf32>
    %41 = vector.broadcast %39 : vector<1x128xf32> to vector<128x128xf32>
    %42 = arith.addf %40, %41 : vector<128x128xf32>
    %cst_29 = arith.constant 0.000000e+00 : f32
    %43 = vector.broadcast %cst_29 : f32 to vector<128x128xf32>
    %44 = arith.maximumf %42, %43 : vector<128x128xf32>
    %45 = arith.truncf %44 : vector<128x128xf32> to vector<128x128xbf16>
    %c0_30 = arith.constant 0 : index
    %c0_31 = arith.constant 0 : index
    %46 = vector.load %arg12[%c0_30, %c0_31] : memref<128x128xbf16, #tpu.memory_space<vmem>>, vector<128x128xbf16>
    %c0_32 = arith.constant 0 : index
    %c0_33 = arith.constant 0 : index
    %47 = vector.load %arg13[%c0_32, %c0_33] : memref<1x128xbf16, #tpu.memory_space<vmem>>, vector<1x128xbf16>
    %48 = arith.extf %47 : vector<1x128xbf16> to vector<1x128xf32>
    %cst_34 = arith.constant dense<0.000000e+00> : vector<128x128xf32>
    %49 = tpu.matmul %45, %46, %cst_34 {dimension_numbers = #tpu.dot_dimension_numbers<[1], [0], [0], [1], [0, 0, 1, 1], [], []>} : vector<128x128xbf16>, vector<128x128xbf16>, vector<128x128xf32> -> vector<128x128xf32>
    %50 = vector.broadcast %48 : vector<1x128xf32> to vector<128x128xf32>
    %51 = arith.addf %49, %50 : vector<128x128xf32>
    %52 = vector.extract_strided_slice %51 {offsets = [0, 0], sizes = [128, 2], strides = [1, 1]} : vector<128x128xf32> to vector<128x2xf32>
    %c0_35 = arith.constant 0 : index
    %c0_36 = arith.constant 0 : index
    %53 = vector.load %arg14[%c0_35, %c0_36] : memref<128x2xf32, #tpu.memory_space<vmem>>, vector<128x2xf32>
    tpu.vector_store %arg14[%c0_35, %c0_36], %52 {strides = array<i32>} : memref<128x2xf32, #tpu.memory_space<vmem>>, vector<128x2xf32>,
    return
  }
  func.func @transform_0(%arg0: i32) -> (i32, i32) {
    %c0_i32 = arith.constant 0 : i32
    %c0_i32_0 = arith.constant 0 : i32
    return %arg0, %c0_i32 : i32, i32
  }
  func.func @transform_1(%arg0: i32) -> (i32, i32) {
    %c0_i32 = arith.constant 0 : i32
    %c0_i32_0 = arith.constant 0 : i32
    %c0_i32_1 = arith.constant 0 : i32
    return %c0_i32, %c0_i32_0 : i32, i32
  }
  func.func @transform_2(%arg0: i32) -> (i32, i32) {
    %c0_i32 = arith.constant 0 : i32
    %c0_i32_0 = arith.constant 0 : i32
    %c0_i32_1 = arith.constant 0 : i32
    return %c0_i32, %c0_i32_0 : i32, i32
  }
  func.func @transform_3(%arg0: i32) -> (i32, i32) {
    %c0_i32 = arith.constant 0 : i32
    %c0_i32_0 = arith.constant 0 : i32
    %c0_i32_1 = arith.constant 0 : i32
    return %c0_i32, %c0_i32_0 : i32, i32
  }
  func.func @transform_4(%arg0: i32) -> (i32, i32) {
    %c0_i32 = arith.constant 0 : i32
    %c0_i32_0 = arith.constant 0 : i32
    %c0_i32_1 = arith.constant 0 : i32
    return %c0_i32, %c0_i32_0 : i32, i32
  }
  func.func @transform_5(%arg0: i32) -> (i32, i32) {
    %c0_i32 = arith.constant 0 : i32
    %c0_i32_0 = arith.constant 0 : i32
    %c0_i32_1 = arith.constant 0 : i32
    return %c0_i32, %c0_i32_0 : i32, i32
  }
  func.func @transform_6(%arg0: i32) -> (i32, i32) {
    %c0_i32 = arith.constant 0 : i32
    %c0_i32_0 = arith.constant 0 : i32
    %c0_i32_1 = arith.constant 0 : i32
    return %c0_i32, %c0_i32_0 : i32, i32
  }
  func.func @transform_7(%arg0: i32) -> (i32, i32) {
    %c0_i32 = arith.constant 0 : i32
    %c0_i32_0 = arith.constant 0 : i32
    %c0_i32_1 = arith.constant 0 : i32
    return %c0_i32, %c0_i32_0 : i32, i32
  }
  func.func @transform_8(%arg0: i32) -> (i32, i32) {
    %c0_i32 = arith.constant 0 : i32
    %c0_i32_0 = arith.constant 0 : i32
    %c0_i32_1 = arith.constant 0 : i32
    return %c0_i32, %c0_i32_0 : i32, i32
  }
  func.func @transform_9(%arg0: i32) -> (i32, i32) {
    %c0_i32 = arith.constant 0 : i32
    %c0_i32_0 = arith.constant 0 : i32
    %c0_i32_1 = arith.constant 0 : i32
    return %c0_i32, %c0_i32_0 : i32, i32
  }
  func.func @transform_10(%arg0: i32) -> (i32, i32) {
    %c0_i32 = arith.constant 0 : i32
    %c0_i32_0 = arith.constant 0 : i32
    %c0_i32_1 = arith.constant 0 : i32
    return %c0_i32, %c0_i32_0 : i32, i32
  }
  func.func @transform_11(%arg0: i32) -> (i32, i32) {
    %c0_i32 = arith.constant 0 : i32
    %c0_i32_0 = arith.constant 0 : i32
    %c0_i32_1 = arith.constant 0 : i32
    return %c0_i32, %c0_i32_0 : i32, i32
  }
  func.func @transform_12(%arg0: i32) -> (i32, i32) {
    %c0_i32 = arith.constant 0 : i32
    %c0_i32_0 = arith.constant 0 : i32
    %c0_i32_1 = arith.constant 0 : i32
    return %c0_i32, %c0_i32_0 : i32, i32
  }
  func.func @transform_13(%arg0: i32) -> (i32, i32) {
    %c0_i32 = arith.constant 0 : i32
    %c0_i32_0 = arith.constant 0 : i32
    return %arg0, %c0_i32 : i32, i32
  }
}

</mosaic_0001>

<bundles_post_ra>
// kernel: tpu_custom_call.1
= control target key start
LH: loop header
LB: loop body
LE: loop exit
PB: predicated region body
PF: predicated region fallthrough
CT: control target
= control target key end

     0   :  { %18 = vsyncpa [#allocation3], 0  ;;  %s1759_s25 = smov 0   ;;  %s2043_s0 = inlined_call_operand.vmem [shape: f32[256,8], index: 0, kind: input, shape index: {}]   ;;  %s2044_s1 = inlined_call_operand.vmem [shape: bf16[8,128], index: 1, kind: input, shape index: {}]   ;;  %s2045_s2 = inlined_call_operand.vmem [shape: bf16[1,128], index: 2, kind: input, shape index: {}]   ;;  %s2046_s3 = inlined_call_operand.vmem [shape: bf16[128,128], index: 3, kind: input, shape index: {}]   ;;  %s2047_s4 = inlined_call_operand.vmem [shape: bf16[1,128], index: 4, kind: input, shape index: {}]   ;;  %s2048_s5 = inlined_call_operand.vmem [shape: bf16[128,128], index: 5, kind: input, shape index: {}]   ;;  %s2049_s6 = inlined_call_operand.vmem [shape: bf16[1,128], index: 6, kind: input, shape index: {}]   ;;  %s2050_s7 = inlined_call_operand.vmem [shape: bf16[128,128], index: 7, kind: input, shape index: {}]   ;;  %s2051_s8 = inlined_call_operand.vmem [shape: bf16[1,128], index: 8, kind: input, shape index: {}]   ;;  %s2052_s9 = inlined_call_operand.vmem [shape: bf16[128,128], index: 9, kind: input, shape index: {}]   ;;  %s2053_s10 = inlined_call_operand.vmem [shape: bf16[1,128], index: 10, kind: input, shape index: {}]   ;;  %s2054_s11 = inlined_call_operand.hbm [shape: bf16[128,128], index: 11, kind: input, shape index: {}]   ;;  %s2055_s12 = inlined_call_operand.vmem [shape: bf16[1,128], index: 12, kind: input, shape index: {}]   ;;  %s2056_s13 = inlined_call_operand.vmem [shape: f32[256,2], index: 13, kind: output, shape index: {}]  }
   0x1 LB: > { %s374_s28 = sshll.u32 %s2054_s11, 4  ;;  %s1377_s29 = sadd.s32 4294967295, %s1684_s25   ;;  %s1684_s25 = sphi %s1759_s25, %s24_s25   ;;  %s375_s28 = int_to_ptr.hbm [resolvable:$true] %s374_s28 }
   0x2   : > { %p1379_p0 = scmp.ge.s32.totalorder %s1684_s25, 1  ;;  %p333_p1 = scmp.lt.s32.totalorder %s1684_s25, 3 }
   0x3   : > { %p1631_p2 = scmp.eq.s32.totalorder %s1377_s29, 0  ;;  %s1686_s30 = smov [#allocation2]  }
   0x4   : > { %p334_p3 = pnand %p1379_p0, %p333_p1  ;;  %s376_s14 = sshll.u32 %s1686_s30, 4  ;;  %s377_s14 = int_to_ptr.vmem [resolvable:$true] %s376_s14 }
   0x5   : > { %s1687_s15 = smov 64   ;;  %s1688_s16 = smov 4  }
   0x6   : > { %p1627_p4 = pneg %p334_p3  ;;  %404 = sbr.rel (%p334_p3) target bundleno = 986 (0x3da), region = 72 }
   0x8   : > { %p1628_p5 = pnand %p1631_p2, %p1627_p4 }
   0xa   : > { %1630 = dma.hbm_to_vmem [thread:$0]  (!%p1628_p5), %s375_s28, 1024, %s377_s14, [#allocation3], %s1687_s15, %s1687_s15, %s1688_s16  }
   0xb   : > { %1679 = dma.done.wait (%p1631_p2), [#allocation3], 1024  }
   0xc   : > { %1681 = vsyncadd (%p1631_p2), [#allocation3], 4294966272  ;;  %s1384_s17 = sshll.u32 %s1377_s29, 4  ;;  %vm531_vm0 = vcmask 1043456   ;;  %v478_v0 = vld [vmem:[%s2044_s1] sm:$0xf] }
   0xd   : > { %p450_p6 = scmp.lt.s32.totalorder %s1384_s17, 31  ;;  %v533_v1 = vsel %vm531_vm0, %v478_v0, 0  ;;  %vm482_vm1 = vcmask 64512   ;;  %v1573_v11 = vld [vmem:[%s2046_s3 + $0x38] sm:$0xff]  ;;  %v1572_v12 = vld [vmem:[%s2046_s3 + $0x30] sm:$0xff]  ;;  %v1571_v15 = vld [vmem:[%s2046_s3 + $0x28] sm:$0xff] }
   0xe   : > { %542 = vmatpush.bf16.msra.mxu0 %v533_v1  ;;  %1606 = vmatpush.bf16.msra.mxu3 %v533_v1  ;;  %v1570_v16 = vld [vmem:[%s2046_s3 + $0x20] sm:$0xff]  ;;  %v1569_v22 = vld [vmem:[%s2046_s3 + $0x18] sm:$0xff]  ;;  %v1568_v23 = vld [vmem:[%s2046_s3 + $0x10] sm:$0xff]  ;;  %vm1292_vm2 = vcmask 15360  }
   0xf   : > { %s2058_s17 = smov (!%p450_p6, %s1384_s17), 31  ;;  %683 = vmatpush.bf16.msra.mxu1 %v1573_v11  ;;  %1607 = vmatpush.bf16.msra.mxu2 %v1573_v11  ;;  %v1567_v24 = vld [vmem:[%s2046_s3 + $0x8] sm:$0xff]  ;;  %v1566_v25 = vld [vmem:[%s2046_s3] sm:$0xff] }
  0x10   : > { %s1385_s18 = sshll.u32 %s2058_s17, 3  ;;  %v479_v26 = vld [vmem:[%s2045_s2] sm:$0x1] }
  0x11   : > { %s1778_s21 = scalar_lea.vmem %s2043_s0, %s1385_s18  ;;  %v480_v27 = vunpack.c.l.bf16 %v479_v26  ;;  %s2006_s16 = scalar_lea.vmem %s2056_s13, %s1385_s18 }
  0x12   : > { %v462_v2 = vld [vmem:[%s1778_s21] sm:$0xff]  ;;  %v463_v3 = vld [vmem:[%s1778_s21 + $0x8] sm:$0xff]  ;;  %v464_v4 = vld [vmem:[%s1778_s21 + $0x10] sm:$0xff]  ;;  %1608 = vmatpush.bf16.msrb.mxu3 %v1573_v11 }
  0x13   : > { %1388 = vmatmul.msk.f32.vlgmr.msra.gmra.mxu0 %vm482_vm1, %v462_v2  ;;  %v465_v5 = vld [vmem:[%s1778_s21 + $0x18] sm:$0xff]  ;;  %v472_v6 = vld [vmem:[%s1778_s21 + $0x50] sm:$0xff]  ;;  %v466_v7 = vld [vmem:[%s1778_s21 + $0x20] sm:$0xff]  ;;  %684 = vmatpush.bf16.msra.mxu1 %v1572_v12  ;;  %v1842_v29 = vperm.slane %v480_v27, 0 }
  0x14   : > { %1398 = vmatmul.msk.f32.vlgmr.msra.gmra.mxu3 %vm482_vm1, %v472_v6  ;;  %v473_v8 = vld [vmem:[%s1778_s21 + $0x58] sm:$0xff]  ;;  %v467_v9 = vld [vmem:[%s1778_s21 + $0x28] sm:$0xff]  ;;  %v474_v10 = vld [vmem:[%s1778_s21 + $0x60] sm:$0xff]  ;;  %1609 = vmatpush.bf16.msra.mxu2 %v1572_v12 }
  0x15   : > { %v468_v13 = vld [vmem:[%s1778_s21 + $0x30] sm:$0xff]  ;;  %v475_v14 = vld [vmem:[%s1778_s21 + $0x68] sm:$0xff]  ;;  %v469_v17 = vld [vmem:[%s1778_s21 + $0x38] sm:$0xff] }
  0x16   : > { %1610 = vmatpush.bf16.msrb.mxu3 %v1572_v12  ;;  %v476_v18 = vld [vmem:[%s1778_s21 + $0x70] sm:$0xff]  ;;  %v470_v19 = vld [vmem:[%s1778_s21 + $0x40] sm:$0xff]  ;;  %v477_v20 = vld [vmem:[%s1778_s21 + $0x78] sm:$0xff] }
  0x17   : > { %685 = vmatpush.bf16.msra.mxu1 %v1571_v15  ;;  %v471_v21 = vld [vmem:[%s1778_s21 + $0x48] sm:$0xff]  ;;  %v1581_v2 = vld [vmem:[%s2048_s5 + $0x38] sm:$0xff] }
  0x18   : > { %1611 = vmatpush.bf16.msra.mxu2 %v1571_v15  ;;  %v1575_v27 = vld [vmem:[%s2048_s5 + $0x8] sm:$0xff] }
  0x1a   : > { %1612 = vmatpush.bf16.msrb.mxu3 %v1571_v15 }
  0x1b   : > { %1389 = vmatmul.msk.f32.gmra.mxu0 %vm482_vm1, %v463_v3  ;;  %686 = vmatpush.bf16.msra.mxu1 %v1570_v16 }
  0x1c   : > { %1399 = vmatmul.msk.f32.gmra.mxu3 %vm482_vm1, %v473_v8  ;;  %1613 = vmatpush.bf16.msra.mxu2 %v1570_v16 }
  0x1e   : > { %1614 = vmatpush.bf16.msrb.mxu3 %v1570_v16 }
  0x1f   : > { %687 = vmatpush.bf16.msra.mxu1 %v1569_v22 }
  0x20   : > { %1615 = vmatpush.bf16.msra.mxu2 %v1569_v22 }
  0x22   : > { %1616 = vmatpush.bf16.msrb.mxu3 %v1569_v22 }
  0x23   : > { %1390 = vmatmul.msk.f32.gmra.mxu0 %vm482_vm1, %v464_v4  ;;  %688 = vmatpush.bf16.msra.mxu1 %v1568_v23 }
  0x24   : > { %1400 = vmatmul.msk.f32.gmra.mxu3 %vm482_vm1, %v474_v10  ;;  %1617 = vmatpush.bf16.msra.mxu2 %v1568_v23 }
  0x26   : > { %1618 = vmatpush.bf16.msrb.mxu3 %v1568_v23 }
  0x27   : > { %689 = vmatpush.bf16.msra.mxu1 %v1567_v24 }
  0x28   : > { %1619 = vmatpush.bf16.msra.mxu2 %v1567_v24 }
  0x2a   : > { %1620 = vmatpush.bf16.msrb.mxu3 %v1567_v24 }
  0x2b   : > { %1391 = vmatmul.msk.f32.gmra.mxu0 %vm482_vm1, %v465_v5  ;;  %690 = vmatpush.bf16.msra.mxu1 %v1566_v25  ;;  %v1580_v5 = vld [vmem:[%s2048_s5 + $0x30] sm:$0xff] }
  0x2c   : > { %1401 = vmatmul.msk.f32.gmra.mxu3 %vm482_vm1, %v475_v14  ;;  %1621 = vmatpush.bf16.msra.mxu2 %v1566_v25  ;;  %v1578_v14 = vld [vmem:[%s2048_s5 + $0x20] sm:$0xff] }
  0x2e   : > { %1622 = vmatpush.bf16.msrb.mxu3 %v1566_v25 }
  0x30   : > { %823 = vmatpush.bf16.msrb.mxu2 %v1581_v2 }
  0x33   : > { %1392 = vmatmul.msk.f32.gmra.mxu0 %vm482_vm1, %v466_v7  ;;  %v1579_v7 = vld [vmem:[%s2048_s5 + $0x28] sm:$0xff] }
  0x34   : > { %1402 = vmatmul.msk.f32.gmra.mxu3 %vm482_vm1, %v476_v18  ;;  %824 = vmatpush.bf16.msrb.mxu2 %v1580_v5 }
  0x38   : > { %825 = vmatpush.bf16.msrb.mxu2 %v1579_v7 }
  0x3b   : > { %1393 = vmatmul.msk.f32.gmra.mxu0 %vm482_vm1, %v467_v9 }
  0x3c   : > { %1403 = vmatmul.msk.f32.gmra.mxu3 %vm482_vm1, %v477_v20  ;;  %826 = vmatpush.bf16.msrb.mxu2 %v1578_v14  ;;  %v1577_v20 = vld [vmem:[%s2048_s5 + $0x18] sm:$0xff]  ;;  %v1587_v14 = vld [vmem:[%s2050_s7 + $0x28] sm:$0xff] }
  0x40   : > { %827 = vmatpush.bf16.msrb.mxu2 %v1577_v20 }
  0x43   : > { %1394 = vmatmul.msk.f32.gmra.mxu0 %vm482_vm1, %v468_v13 }
  0x4b   : > { %1395 = vmatmul.msk.f32.gmra.mxu0 %vm482_vm1, %v469_v17 }
  0x53   : > { %1396 = vmatmul.msk.f32.gmra.mxu0 %vm482_vm1, %v470_v19 }
  0x5b   : > { %1397 = vmatmul.msk.f32.gmra.mxu0 %vm482_vm1, %v471_v21  ;;  %v1576_v21 = vld [vmem:[%s2048_s5 + $0x10] sm:$0xff] }
  0x5c   : > { %828 = vmatpush.bf16.msrb.mxu2 %v1576_v21  ;;  %v1585_v21 = vld [vmem:[%s2050_s7 + $0x18] sm:$0xff] }
  0x60   : > { %829 = vmatpush.bf16.msrb.mxu2 %v1575_v27 }
  0x90   : > { %v544_v28 = vpop.f32.mrf.mxu0 }
  0x91   : > { %v545_v30 = vadd.f32 %v544_v28, %v1842_v29  ;;  %v1574_v28 = vld [vmem:[%s2048_s5] sm:$0xff] }
  0x92   : > { %830 = vmatpush.bf16.msrb.mxu2 %v1574_v28  ;;  %v1582_v28 = vld [vmem:[%s2050_s7] sm:$0xff] }
  0x93   : > { %v592_v33 = vmax.f32 %v545_v30, 0.0  ;;  %v632_v30 = vld [vmem:[%s2047_s4] sm:$0x1] }
  0x97   : > { %v574_v44 = vpop.f32.mrf.mxu3 }
  0x98   : > { %v547_v31 = vpop.f32.mrf.mxu0  ;;  %v575_v22 = vadd.f32 %v574_v44, %v1842_v29 }
  0x99   : > { %v548_v32 = vadd.f32 %v547_v31, %v1842_v29 }
  0x9a   : > { %v602_v24 = vmax.f32 %v575_v22, 0.0 }
  0x9b   : > { %v593_v34 = vmax.f32 %v548_v32, 0.0 }
  0x9d   : > { %v608_v35 = vpack.c.bf16 %v593_v34, %v592_v33 }
  0x9f   : > { %691 = vmatmul.bf16.vlgmr.msra.gmra.mxu1 %v608_v35  ;;  %v577_v47 = vpop.f32.mrf.mxu3 }
  0xa0   : > { %v550_v36 = vpop.f32.mrf.mxu0  ;;  %v578_v23 = vadd.f32 %v577_v47, %v1842_v29 }
  0xa1   : > { %v551_v37 = vadd.f32 %v550_v36, %v1842_v29 }
  0xa2   : > { %v603_v25 = vmax.f32 %v578_v23, 0.0  ;;  %v1584_v23 = vld [vmem:[%s2050_s7 + $0x10] sm:$0xff] }
  0xa3   : > { %v594_v40 = vmax.f32 %v551_v37, 0.0 }
  0xa4   : > { %v613_v26 = vpack.c.bf16 %v603_v25, %v602_v24  ;;  %v1583_v25 = vld [vmem:[%s2050_s7 + $0x8] sm:$0xff] }
  0xa7   : > { %v580_v53 = vpop.f32.mrf.mxu3 }
  0xa8   : > { %v553_v38 = vpop.f32.mrf.mxu0  ;;  %v581_v54 = vadd.f32 %v580_v53, %v1842_v29 }
  0xa9   : > { %v554_v39 = vadd.f32 %v553_v38, %v1842_v29 }
  0xaa   : > { %v604_v59 = vmax.f32 %v581_v54, 0.0 }
  0xab   : > { %v595_v41 = vmax.f32 %v554_v39, 0.0 }
  0xad   : > { %v609_v42 = vpack.c.bf16 %v595_v41, %v594_v40 }
  0xaf   : > { %696 = vmatmul.bf16.gmra.mxu1 %v609_v42  ;;  %v583_v57 = vpop.f32.mrf.mxu3 }
  0xb0   : > { %v556_v43 = vpop.f32.mrf.mxu0  ;;  %v584_v60 = vadd.f32 %v583_v57, %v1842_v29 }
  0xb1   : > { %v557_v45 = vadd.f32 %v556_v43, %v1842_v29 }
  0xb2   : > { %v605_v63 = vmax.f32 %v584_v60, 0.0 }
  0xb3   : > { %v596_v49 = vmax.f32 %v557_v45, 0.0 }
  0xb4   : > { %v614_v1 = vpack.c.bf16 %v605_v63, %v604_v59 }
  0xb6   : > { %721 = vmatmul.bf16.vlgmr.msrb.gmra.mxu3 %v614_v1 }
  0xb7   : > { %v586_v4 = vpop.f32.mrf.mxu3 }
  0xb8   : > { %v559_v46 = vpop.f32.mrf.mxu0  ;;  %v587_v6 = vadd.f32 %v586_v4, %v1842_v29 }
  0xb9   : > { %v560_v48 = vadd.f32 %v559_v46, %v1842_v29 }
  0xba   : > { %v606_v12 = vmax.f32 %v587_v6, 0.0 }
  0xbb   : > { %v597_v50 = vmax.f32 %v560_v48, 0.0 }
  0xbd   : > { %v610_v51 = vpack.c.bf16 %v597_v50, %v596_v49 }
  0xbf   : > { %701 = vmatmul.bf16.vlgmr.msra.gmra.mxu2 %v610_v51  ;;  %v589_v10 = vpop.f32.mrf.mxu3 }
  0xc0   : > { %v562_v52 = vpop.f32.mrf.mxu0  ;;  %v590_v13 = vadd.f32 %v589_v10, %v1842_v29 }
  0xc1   : > { %v563_v55 = vadd.f32 %v562_v52, %v1842_v29 }
  0xc2   : > { %v607_v17 = vmax.f32 %v590_v13, 0.0  ;;  %v1588_v13 = vld [vmem:[%s2050_s7 + $0x30] sm:$0xff] }
  0xc3   : > { %v598_v61 = vmax.f32 %v563_v55, 0.0 }
  0xc4   : > { %v615_v19 = vpack.c.bf16 %v607_v17, %v606_v12 }
  0xc6   : > { %726 = vmatmul.bf16.gmra.mxu3 %v615_v19 }
  0xc8   : > { %v565_v56 = vpop.f32.mrf.mxu0 }
  0xc9   : > { %v566_v58 = vadd.f32 %v565_v56, %v1842_v29 }
  0xcb   : > { %v599_v62 = vmax.f32 %v566_v58, 0.0 }
  0xcd   : > { %v611_v0 = vpack.c.bf16 %v599_v62, %v598_v61 }
  0xcf   : > { %706 = vmatmul.bf16.gmra.mxu2 %v611_v0 }
  0xd0   : > { %v568_v3 = vpop.f32.mrf.mxu0 }
  0xd1   : > { %v569_v8 = vadd.f32 %v568_v3, %v1842_v29  ;;  %v1589_v3 = vld [vmem:[%s2050_s7 + $0x38] sm:$0xff] }
  0xd2   : > { %963 = vmatpush.bf16.msra.mxu3 %v1589_v3 }
  0xd3   : > { %v600_v15 = vmax.f32 %v569_v8, 0.0 }
  0xd6   : > { %964 = vmatpush.bf16.msra.mxu3 %v1588_v13 }
  0xd8   : > { %v571_v9 = vpop.f32.mrf.mxu0 }
  0xd9   : > { %v572_v11 = vadd.f32 %v571_v9, %v1842_v29  ;;  %v633_v29 = vunpack.c.l.bf16 %v632_v30 }
  0xda   : > { %965 = vmatpush.bf16.msra.mxu3 %v1587_v14 }
  0xdb   : > { %v601_v16 = vmax.f32 %v572_v11, 0.0  ;;  %v1887_v32 = vperm.slane %v633_v29, 0 }
  0xdd   : > { %v612_v18 = vpack.c.bf16 %v601_v16, %v600_v15  ;;  %v1586_v15 = vld [vmem:[%s2050_s7 + $0x20] sm:$0xff] }
  0xde   : > { %966 = vmatpush.bf16.msra.mxu3 %v1586_v15 }
  0xdf   : > { %711 = vmatmul.bf16.gmra.mxu2 %v612_v18 }
  0xe2   : > { %967 = vmatpush.bf16.msra.mxu3 %v1585_v21 }
  0xe6   : > { %968 = vmatpush.bf16.msra.mxu3 %v1584_v23 }
  0xea   : > { %969 = vmatpush.bf16.msra.mxu3 %v1583_v25 }
  0xee   : > { %970 = vmatpush.bf16.msra.mxu3 %v1582_v28  ;;  %v1590_v28 = vld [vmem:[%s2052_s9] sm:$0xff] }
  0xef   : > { %716 = vmatmul.bf16.gmra.mxu2 %v613_v26 }
 0x11c   : > { %v692_v31 = vpop.f32.mrf.mxu1 }
 0x11d   : > { %v693_v33 = vadd.f32 %v692_v31, %v1887_v32 }
 0x11f   : > { %v732_v36 = vmax.f32 %v693_v33, 0.0  ;;  %v772_v33 = vld [vmem:[%s2049_s6] sm:$0x1] }
 0x124   : > { %v694_v34 = vpop.f32.mrf.mxu1 }
 0x125   : > { %v695_v35 = vadd.f32 %v694_v34, %v1887_v32  ;;  %v773_v34 = vunpack.c.l.bf16 %v772_v33 }
 0x127   : > { %v733_v37 = vmax.f32 %v695_v35, 0.0 }
 0x129   : > { %v748_v38 = vpack.c.bf16 %v733_v37, %v732_v36  ;;  %v1932_v36 = vperm.slane %v773_v34, 0 }
 0x12b   : > { %831 = vmatmul.bf16.vlgmr.msrb.gmra.mxu2 %v748_v38 }
 0x12c   : > { %v697_v39 = vpop.f32.mrf.mxu1 }
 0x12d   : > { %v698_v40 = vadd.f32 %v697_v39, %v1887_v32 }
 0x12f   : > { %v734_v43 = vmax.f32 %v698_v40, 0.0 }
 0x134   : > { %v699_v41 = vpop.f32.mrf.mxu1 }
 0x135   : > { %v700_v42 = vadd.f32 %v699_v41, %v1887_v32 }
 0x137   : > { %v735_v44 = vmax.f32 %v700_v42, 0.0 }
 0x139   : > { %v749_v45 = vpack.c.bf16 %v735_v44, %v734_v43  ;;  %v722_v5 = vpop.f32.mrf.mxu3 }
 0x13a   : > { %v723_v16 = vadd.f32 %v722_v5, %v1887_v32 }
 0x13b   : > { %836 = vmatmul.bf16.gmra.mxu2 %v749_v45 }
 0x13c   : > { %v744_v19 = vmax.f32 %v723_v16, 0.0 }
 0x141   : > { %v724_v12 = vpop.f32.mrf.mxu3 }
 0x142   : > { %v702_v46 = vpop.f32.mrf.mxu2  ;;  %v725_v17 = vadd.f32 %v724_v12, %v1887_v32 }
 0x143   : > { %v703_v47 = vadd.f32 %v702_v46, %v1887_v32 }
 0x144   : > { %v745_v20 = vmax.f32 %v725_v17, 0.0  ;;  %v1593_v17 = vld [vmem:[%s2052_s9 + $0x18] sm:$0xff] }
 0x145   : > { %v736_v50 = vmax.f32 %v703_v47, 0.0 }
 0x146   : > { %v754_v22 = vpack.c.bf16 %v745_v20, %v744_v19 }
 0x149   : > { %v727_v18 = vpop.f32.mrf.mxu3 }
 0x14a   : > { %v704_v48 = vpop.f32.mrf.mxu2  ;;  %v728_v26 = vadd.f32 %v727_v18, %v1887_v32  ;;  %v1592_v18 = vld [vmem:[%s2052_s9 + $0x10] sm:$0xff] }
 0x14b   : > { %v705_v49 = vadd.f32 %v704_v48, %v1887_v32 }
 0x14c   : > { %v746_v30 = vmax.f32 %v728_v26, 0.0  ;;  %v1591_v26 = vld [vmem:[%s2052_s9 + $0x8] sm:$0xff] }
 0x14d   : > { %v737_v51 = vmax.f32 %v705_v49, 0.0 }
 0x14f   : > { %v750_v52 = vpack.c.bf16 %v737_v51, %v736_v50 }
 0x151   : > { %841 = vmatmul.bf16.gmra.mxu2 %v750_v52  ;;  %v729_v24 = vpop.f32.mrf.mxu3 }
 0x152   : > { %v707_v53 = vpop.f32.mrf.mxu2  ;;  %v730_v27 = vadd.f32 %v729_v24, %v1887_v32 }
 0x153   : > { %v708_v54 = vadd.f32 %v707_v53, %v1887_v32 }
 0x154   : > { %v747_v29 = vmax.f32 %v730_v27, 0.0 }
 0x155   : > { %v738_v57 = vmax.f32 %v708_v54, 0.0 }
 0x156   : > { %v755_v31 = vpack.c.bf16 %v747_v29, %v746_v30 }
 0x15a   : > { %v709_v55 = vpop.f32.mrf.mxu2 }
 0x15b   : > { %v710_v56 = vadd.f32 %v709_v55, %v1887_v32 }
 0x15d   : > { %v739_v58 = vmax.f32 %v710_v56, 0.0 }
 0x15f   : > { %v751_v59 = vpack.c.bf16 %v739_v58, %v738_v57  ;;  %v1597_v57 = vld [vmem:[%s2052_s9 + $0x38] sm:$0xff] }
 0x160   : > { %1103 = vmatpush.bf16.msrb.mxu0 %v1597_v57 }
 0x161   : > { %846 = vmatmul.bf16.gmra.mxu2 %v751_v59 }
 0x162   : > { %v712_v60 = vpop.f32.mrf.mxu2 }
 0x163   : > { %v713_v61 = vadd.f32 %v712_v60, %v1887_v32 }
 0x165   : > { %v740_v0 = vmax.f32 %v713_v61, 0.0 }
 0x16a   : > { %v714_v62 = vpop.f32.mrf.mxu2 }
 0x16b   : > { %v715_v63 = vadd.f32 %v714_v62, %v1887_v32 }
 0x16d   : > { %v741_v1 = vmax.f32 %v715_v63, 0.0  ;;  %v1596_v63 = vld [vmem:[%s2052_s9 + $0x30] sm:$0xff] }
 0x16e   : > { %1104 = vmatpush.bf16.msrb.mxu0 %v1596_v63 }
 0x16f   : > { %v752_v2 = vpack.c.bf16 %v741_v1, %v740_v0 }
 0x171   : > { %851 = vmatmul.bf16.gmra.mxu2 %v752_v2  ;;  %v1595_v2 = vld [vmem:[%s2052_s9 + $0x28] sm:$0xff] }
 0x172   : > { %v717_v4 = vpop.f32.mrf.mxu2  ;;  %1105 = vmatpush.bf16.msrb.mxu0 %v1595_v2 }
 0x173   : > { %v718_v6 = vadd.f32 %v717_v4, %v1887_v32 }
 0x175   : > { %v742_v9 = vmax.f32 %v718_v6, 0.0 }
 0x17a   : > { %v719_v7 = vpop.f32.mrf.mxu2 }
 0x17b   : > { %v720_v8 = vadd.f32 %v719_v7, %v1887_v32 }
 0x17d   : > { %v743_v10 = vmax.f32 %v720_v8, 0.0 }
 0x17f   : > { %v753_v11 = vpack.c.bf16 %v743_v10, %v742_v9  ;;  %v1594_v9 = vld [vmem:[%s2052_s9 + $0x20] sm:$0xff] }
 0x180   : > { %1106 = vmatpush.bf16.msrb.mxu0 %v1594_v9 }
 0x181   : > { %856 = vmatmul.bf16.gmra.mxu2 %v753_v11 }
 0x184   : > { %1107 = vmatpush.bf16.msrb.mxu0 %v1593_v17  ;;  %v1603_v17 = vld [vmem:[#allocation2 + $0x28] sm:$0xff] }
 0x188   : > { %1108 = vmatpush.bf16.msrb.mxu0 %v1592_v18 }
 0x18c   : > { %1109 = vmatpush.bf16.msrb.mxu0 %v1591_v26 }
 0x190   : > { %1110 = vmatpush.bf16.msrb.mxu0 %v1590_v28  ;;  %v1599_v28 = vld [vmem:[#allocation2 + $0x8] sm:$0xff] }
 0x191   : > { %861 = vmatmul.bf16.gmra.mxu2 %v754_v22 }
 0x1a1   : > { %866 = vmatmul.bf16.gmra.mxu2 %v755_v31 }
 0x1ae   : > { %v832_v35 = vpop.f32.mrf.mxu2 }
 0x1af   : > { %v833_v37 = vadd.f32 %v832_v35, %v1932_v36 }
 0x1b1   : > { %v872_v39 = vmax.f32 %v833_v37, 0.0  ;;  %v912_v37 = vld [vmem:[%s2051_s8] sm:$0x1] }
 0x1b6   : > { %v834_v32 = vpop.f32.mrf.mxu2 }
 0x1b7   : > { %v835_v38 = vadd.f32 %v834_v32, %v1932_v36  ;;  %v913_v32 = vunpack.c.l.bf16 %v912_v37 }
 0x1b9   : > { %v873_v40 = vmax.f32 %v835_v38, 0.0 }
 0x1bb   : > { %v888_v41 = vpack.c.bf16 %v873_v40, %v872_v39  ;;  %v1977_v39 = vperm.slane %v913_v32, 0 }
 0x1bd   : > { %971 = vmatmul.bf16.vlgmr.msra.gmra.mxu3 %v888_v41 }
 0x1be   : > { %v837_v42 = vpop.f32.mrf.mxu2 }
 0x1bf   : > { %v838_v43 = vadd.f32 %v837_v42, %v1932_v36 }
 0x1c1   : > { %v874_v46 = vmax.f32 %v838_v43, 0.0 }
 0x1c6   : > { %v839_v44 = vpop.f32.mrf.mxu2 }
 0x1c7   : > { %v840_v45 = vadd.f32 %v839_v44, %v1932_v36 }
 0x1c9   : > { %v875_v47 = vmax.f32 %v840_v45, 0.0 }
 0x1cb   : > { %v889_v48 = vpack.c.bf16 %v875_v47, %v874_v46 }
 0x1cd   : > { %976 = vmatmul.bf16.gmra.mxu3 %v889_v48 }
 0x1d4   : > { %v842_v49 = vpop.f32.mrf.mxu2 }
 0x1d5   : > { %v843_v50 = vadd.f32 %v842_v49, %v1932_v36 }
 0x1d7   : > { %v876_v53 = vmax.f32 %v843_v50, 0.0 }
 0x1dc   : > { %v844_v51 = vpop.f32.mrf.mxu2 }
 0x1dd   : > { %v845_v52 = vadd.f32 %v844_v51, %v1932_v36 }
 0x1df   : > { %v877_v54 = vmax.f32 %v845_v52, 0.0 }
 0x1e1   : > { %v890_v55 = vpack.c.bf16 %v877_v54, %v876_v53 }
 0x1e3   : > { %981 = vmatmul.bf16.gmra.mxu3 %v890_v55 }
 0x1e4   : > { %v847_v56 = vpop.f32.mrf.mxu2 }
 0x1e5   : > { %v848_v58 = vadd.f32 %v847_v56, %v1932_v36 }
 0x1e7   : > { %v878_v61 = vmax.f32 %v848_v58, 0.0 }
 0x1ec   : > { %v849_v59 = vpop.f32.mrf.mxu2 }
 0x1ed   : > { %v850_v60 = vadd.f32 %v849_v59, %v1932_v36 }
 0x1ef   : > { %v879_v62 = vmax.f32 %v850_v60, 0.0 }
 0x1f1   : > { %v891_v0 = vpack.c.bf16 %v879_v62, %v878_v61 }
 0x1f3   : > { %986 = vmatmul.bf16.gmra.mxu3 %v891_v0 }
 0x1f4   : > { %v852_v1 = vpop.f32.mrf.mxu2 }
 0x1f5   : > { %v853_v3 = vadd.f32 %v852_v1, %v1932_v36 }
 0x1f7   : > { %v880_v6 = vmax.f32 %v853_v3, 0.0 }
 0x1fc   : > { %v854_v4 = vpop.f32.mrf.mxu2 }
 0x1fd   : > { %v855_v5 = vadd.f32 %v854_v4, %v1932_v36 }
 0x1ff   : > { %v881_v7 = vmax.f32 %v855_v5, 0.0 }
 0x201   : > { %v892_v8 = vpack.c.bf16 %v881_v7, %v880_v6 }
 0x203   : > { %991 = vmatmul.bf16.gmra.mxu3 %v892_v8 }
 0x204   : > { %v857_v10 = vpop.f32.mrf.mxu2 }
 0x205   : > { %v858_v11 = vadd.f32 %v857_v10, %v1932_v36  ;;  %v1605_v10 = vld [vmem:[#allocation2 + $0x38] sm:$0xff] }
 0x206   : > { %1243 = vmatpush.bf16.msrb.mxu1 %v1605_v10 }
 0x207   : > { %v882_v14 = vmax.f32 %v858_v11, 0.0 }
 0x20c   : > { %v859_v12 = vpop.f32.mrf.mxu2 }
 0x20d   : > { %v860_v13 = vadd.f32 %v859_v12, %v1932_v36 }
 0x20f   : > { %v883_v15 = vmax.f32 %v860_v13, 0.0  ;;  %v1604_v13 = vld [vmem:[#allocation2 + $0x30] sm:$0xff] }
 0x210   : > { %1244 = vmatpush.bf16.msrb.mxu1 %v1604_v13 }
 0x211   : > { %v893_v16 = vpack.c.bf16 %v883_v15, %v882_v14 }
 0x213   : > { %996 = vmatmul.bf16.gmra.mxu3 %v893_v16 }
 0x214   : > { %v862_v19 = vpop.f32.mrf.mxu2  ;;  %1245 = vmatpush.bf16.msrb.mxu1 %v1603_v17 }
 0x215   : > { %v863_v20 = vadd.f32 %v862_v19, %v1932_v36  ;;  %v1602_v19 = vld [vmem:[#allocation2 + $0x20] sm:$0xff] }
 0x217   : > { %v884_v23 = vmax.f32 %v863_v20, 0.0 }
 0x218   : > { %1246 = vmatpush.bf16.msrb.mxu1 %v1602_v19 }
 0x21c   : > { %v864_v21 = vpop.f32.mrf.mxu2 }
 0x21d   : > { %v865_v22 = vadd.f32 %v864_v21, %v1932_v36  ;;  %v1601_v21 = vld [vmem:[#allocation2 + $0x18] sm:$0xff] }
 0x21e   : > { %1247 = vmatpush.bf16.msrb.mxu1 %v1601_v21 }
 0x21f   : > { %v885_v24 = vmax.f32 %v865_v22, 0.0 }
 0x221   : > { %v894_v25 = vpack.c.bf16 %v885_v24, %v884_v23  ;;  %v1600_v24 = vld [vmem:[#allocation2 + $0x10] sm:$0xff] }
 0x222   : > { %1248 = vmatpush.bf16.msrb.mxu1 %v1600_v24 }
 0x223   : > { %1001 = vmatmul.bf16.gmra.mxu3 %v894_v25 }
 0x224   : > { %v867_v27 = vpop.f32.mrf.mxu2 }
 0x225   : > { %v868_v30 = vadd.f32 %v867_v27, %v1932_v36 }
 0x226   : > { %1249 = vmatpush.bf16.msrb.mxu1 %v1599_v28 }
 0x227   : > { %v886_v33 = vmax.f32 %v868_v30, 0.0 }
 0x22c   : > { %v869_v29 = vpop.f32.mrf.mxu2 }
 0x22d   : > { %v870_v31 = vadd.f32 %v869_v29, %v1932_v36 }
 0x22f   : > { %v887_v34 = vmax.f32 %v870_v31, 0.0  ;;  %v1598_v31 = vld [vmem:[#allocation2] sm:$0xff] }
 0x230   : > { %1250 = vmatpush.bf16.msrb.mxu1 %v1598_v31 }
 0x231   : > { %v895_v35 = vpack.c.bf16 %v887_v34, %v886_v33 }
 0x233   : > { %1006 = vmatmul.bf16.gmra.mxu3 %v895_v35 }
 0x240   : > { %v972_v38 = vpop.f32.mrf.mxu3 }
 0x241   : > { %v973_v40 = vadd.f32 %v972_v38, %v1977_v39 }
 0x243   : > { %v1012_v43 = vmax.f32 %v973_v40, 0.0  ;;  %v1052_v40 = vld [vmem:[%s2053_s10] sm:$0x1] }
 0x248   : > { %v974_v41 = vpop.f32.mrf.mxu3 }
 0x249   : > { %v975_v42 = vadd.f32 %v974_v41, %v1977_v39  ;;  %v1053_v41 = vunpack.c.l.bf16 %v1052_v40 }
 0x24b   : > { %v1013_v44 = vmax.f32 %v975_v42, 0.0 }
 0x24d   : > { %v1028_v36 = vpack.c.bf16 %v1013_v44, %v1012_v43  ;;  %v1054_v43 = vperm.slane %v1053_v41, 0 }
 0x24f   : > { %1111 = vmatmul.bf16.vlgmr.msrb.gmra.mxu0 %v1028_v36 }
 0x250   : > { %v977_v45 = vpop.f32.mrf.mxu3 }
 0x251   : > { %v978_v46 = vadd.f32 %v977_v45, %v1977_v39 }
 0x253   : > { %v1014_v49 = vmax.f32 %v978_v46, 0.0 }
 0x258   : > { %v979_v47 = vpop.f32.mrf.mxu3 }
 0x259   : > { %v980_v48 = vadd.f32 %v979_v47, %v1977_v39 }
 0x25b   : > { %v1015_v50 = vmax.f32 %v980_v48, 0.0 }
 0x25d   : > { %v1029_v51 = vpack.c.bf16 %v1015_v50, %v1014_v49 }
 0x25f   : > { %1116 = vmatmul.bf16.gmra.mxu0 %v1029_v51 }
 0x266   : > { %v982_v52 = vpop.f32.mrf.mxu3 }
 0x267   : > { %v983_v53 = vadd.f32 %v982_v52, %v1977_v39 }
 0x269   : > { %v1016_v56 = vmax.f32 %v983_v53, 0.0 }
 0x26e   : > { %v984_v54 = vpop.f32.mrf.mxu3 }
 0x26f   : > { %v985_v55 = vadd.f32 %v984_v54, %v1977_v39 }
 0x271   : > { %v1017_v57 = vmax.f32 %v985_v55, 0.0 }
 0x273   : > { %v1030_v58 = vpack.c.bf16 %v1017_v57, %v1016_v56 }
 0x275   : > { %1121 = vmatmul.bf16.gmra.mxu0 %v1030_v58 }
 0x276   : > { %v987_v59 = vpop.f32.mrf.mxu3 }
 0x277   : > { %v988_v60 = vadd.f32 %v987_v59, %v1977_v39 }
 0x279   : > { %v1018_v63 = vmax.f32 %v988_v60, 0.0 }
 0x27e   : > { %v989_v61 = vpop.f32.mrf.mxu3 }
 0x27f   : > { %v990_v62 = vadd.f32 %v989_v61, %v1977_v39 }
 0x281   : > { %v1019_v0 = vmax.f32 %v990_v62, 0.0 }
 0x283   : > { %v1031_v1 = vpack.c.bf16 %v1019_v0, %v1018_v63 }
 0x285   : > { %1126 = vmatmul.bf16.gmra.mxu0 %v1031_v1 }
 0x286   : > { %v992_v2 = vpop.f32.mrf.mxu3 }
 0x287   : > { %v993_v3 = vadd.f32 %v992_v2, %v1977_v39 }
 0x289   : > { %v1020_v6 = vmax.f32 %v993_v3, 0.0 }
 0x28e   : > { %v994_v4 = vpop.f32.mrf.mxu3 }
 0x28f   : > { %v995_v5 = vadd.f32 %v994_v4, %v1977_v39 }
 0x291   : > { %v1021_v7 = vmax.f32 %v995_v5, 0.0 }
 0x293   : > { %v1032_v8 = vpack.c.bf16 %v1021_v7, %v1020_v6 }
 0x295   : > { %1131 = vmatmul.bf16.gmra.mxu0 %v1032_v8 }
 0x296   : > { %v997_v9 = vpop.f32.mrf.mxu3 }
 0x297   : > { %v998_v11 = vadd.f32 %v997_v9, %v1977_v39 }
 0x299   : > { %v1022_v15 = vmax.f32 %v998_v11, 0.0 }
 0x29e   : > { %v999_v12 = vpop.f32.mrf.mxu3 }
 0x29f   : > { %v1000_v14 = vadd.f32 %v999_v12, %v1977_v39 }
 0x2a1   : > { %v1023_v16 = vmax.f32 %v1000_v14, 0.0 }
 0x2a3   : > { %v1033_v18 = vpack.c.bf16 %v1023_v16, %v1022_v15 }
 0x2a5   : > { %1136 = vmatmul.bf16.gmra.mxu0 %v1033_v18 }
 0x2a6   : > { %v1002_v20 = vpop.f32.mrf.mxu3 }
 0x2a7   : > { %v1003_v22 = vadd.f32 %v1002_v20, %v1977_v39 }
 0x2a9   : > { %v1024_v26 = vmax.f32 %v1003_v22, 0.0 }
 0x2ae   : > { %v1004_v23 = vpop.f32.mrf.mxu3 }
 0x2af   : > { %v1005_v25 = vadd.f32 %v1004_v23, %v1977_v39 }
 0x2b1   : > { %v1025_v27 = vmax.f32 %v1005_v25, 0.0 }
 0x2b3   : > { %v1034_v30 = vpack.c.bf16 %v1025_v27, %v1024_v26 }
 0x2b5   : > { %1141 = vmatmul.bf16.gmra.mxu0 %v1034_v30 }
 0x2b6   : > { %v1007_v29 = vpop.f32.mrf.mxu3 }
 0x2b7   : > { %v1008_v33 = vadd.f32 %v1007_v29, %v1977_v39 }
 0x2b9   : > { %v1026_v37 = vmax.f32 %v1008_v33, 0.0  ;;  %v1192_v33 = vld [vmem:[%s2055_s12] sm:$0x1] }
 0x2be   : > { %v1009_v34 = vpop.f32.mrf.mxu3 }
 0x2bf   : > { %v1010_v35 = vadd.f32 %v1009_v34, %v1977_v39 }
 0x2c1   : > { %v1027_v32 = vmax.f32 %v1010_v35, 0.0  ;;  %v1193_v35 = vunpack.c.l.bf16 %v1192_v33 }
 0x2c3   : > { %v1035_v38 = vpack.c.bf16 %v1027_v32, %v1026_v37  ;;  %v1194_v37 = vperm.slane %v1193_v35, 0 }
 0x2c5   : > { %1146 = vmatmul.bf16.gmra.mxu0 %v1035_v38 }
 0x2cc   : > { %v1112_v42 = vpop.f32.mrf.mxu0 }
 0x2cd   : > { %v1113_v44 = vadd.f32 %v1112_v42, %v1054_v43 }
 0x2cf   : > { %v1152_v46 = vmax.f32 %v1113_v44, 0.0 }
 0x2d4   : > { %v1114_v36 = vpop.f32.mrf.mxu0 }
 0x2d5   : > { %v1115_v45 = vadd.f32 %v1114_v36, %v1054_v43 }
 0x2d7   : > { %v1153_v47 = vmax.f32 %v1115_v45, 0.0 }
 0x2d9   : > { %v1168_v48 = vpack.c.bf16 %v1153_v47, %v1152_v46 }
 0x2db   : > { %1251 = vmatmul.bf16.vlgmr.msrb.gmra.mxu1 %v1168_v48 }
 0x2dc   : > { %v1117_v49 = vpop.f32.mrf.mxu0 }
 0x2dd   : > { %v1118_v39 = vadd.f32 %v1117_v49, %v1054_v43 }
 0x2df   : > { %v1154_v52 = vmax.f32 %v1118_v39, 0.0 }
 0x2e4   : > { %v1119_v50 = vpop.f32.mrf.mxu0 }
 0x2e5   : > { %v1120_v51 = vadd.f32 %v1119_v50, %v1054_v43 }
 0x2e7   : > { %v1155_v53 = vmax.f32 %v1120_v51, 0.0 }
 0x2e9   : > { %v1169_v54 = vpack.c.bf16 %v1155_v53, %v1154_v52 }
 0x2eb   : > { %1256 = vmatmul.bf16.gmra.mxu1 %v1169_v54 }
 0x2f2   : > { %v1122_v55 = vpop.f32.mrf.mxu0 }
 0x2f3   : > { %v1123_v56 = vadd.f32 %v1122_v55, %v1054_v43 }
 0x2f5   : > { %v1156_v59 = vmax.f32 %v1123_v56, 0.0 }
 0x2fa   : > { %v1124_v57 = vpop.f32.mrf.mxu0 }
 0x2fb   : > { %v1125_v58 = vadd.f32 %v1124_v57, %v1054_v43 }
 0x2fd   : > { %v1157_v60 = vmax.f32 %v1125_v58, 0.0 }
 0x2ff   : > { %v1170_v61 = vpack.c.bf16 %v1157_v60, %v1156_v59 }
 0x301   : > { %1261 = vmatmul.bf16.gmra.mxu1 %v1170_v61 }
 0x302   : > { %v1127_v62 = vpop.f32.mrf.mxu0 }
 0x303   : > { %v1128_v63 = vadd.f32 %v1127_v62, %v1054_v43 }
 0x305   : > { %v1158_v2 = vmax.f32 %v1128_v63, 0.0 }
 0x30a   : > { %v1129_v0 = vpop.f32.mrf.mxu0 }
 0x30b   : > { %v1130_v1 = vadd.f32 %v1129_v0, %v1054_v43 }
 0x30d   : > { %v1159_v3 = vmax.f32 %v1130_v1, 0.0 }
 0x30f   : > { %v1171_v4 = vpack.c.bf16 %v1159_v3, %v1158_v2 }
 0x311   : > { %1266 = vmatmul.bf16.gmra.mxu1 %v1171_v4 }
 0x312   : > { %v1132_v5 = vpop.f32.mrf.mxu0 }
 0x313   : > { %v1133_v6 = vadd.f32 %v1132_v5, %v1054_v43 }
 0x315   : > { %v1160_v9 = vmax.f32 %v1133_v6, 0.0 }
 0x31a   : > { %v1134_v7 = vpop.f32.mrf.mxu0 }
 0x31b   : > { %v1135_v8 = vadd.f32 %v1134_v7, %v1054_v43 }
 0x31d   : > { %v1161_v10 = vmax.f32 %v1135_v8, 0.0 }
 0x31f   : > { %v1172_v11 = vpack.c.bf16 %v1161_v10, %v1160_v9 }
 0x321   : > { %1271 = vmatmul.bf16.gmra.mxu1 %v1172_v11 }
 0x322   : > { %v1137_v12 = vpop.f32.mrf.mxu0 }
 0x323   : > { %v1138_v13 = vadd.f32 %v1137_v12, %v1054_v43 }
 0x325   : > { %v1162_v16 = vmax.f32 %v1138_v13, 0.0 }
 0x32a   : > { %v1139_v14 = vpop.f32.mrf.mxu0 }
 0x32b   : > { %v1140_v15 = vadd.f32 %v1139_v14, %v1054_v43 }
 0x32d   : > { %v1163_v17 = vmax.f32 %v1140_v15, 0.0 }
 0x32f   : > { %v1173_v18 = vpack.c.bf16 %v1163_v17, %v1162_v16 }
 0x331   : > { %1276 = vmatmul.bf16.gmra.mxu1 %v1173_v18 }
 0x332   : > { %v1142_v19 = vpop.f32.mrf.mxu0 }
 0x333   : > { %v1143_v20 = vadd.f32 %v1142_v19, %v1054_v43 }
 0x335   : > { %v1164_v23 = vmax.f32 %v1143_v20, 0.0 }
 0x33a   : > { %v1144_v21 = vpop.f32.mrf.mxu0 }
 0x33b   : > { %v1145_v22 = vadd.f32 %v1144_v21, %v1054_v43 }
 0x33d   : > { %v1165_v24 = vmax.f32 %v1145_v22, 0.0 }
 0x33f   : > { %v1174_v25 = vpack.c.bf16 %v1165_v24, %v1164_v23 }
 0x341   : > { %1281 = vmatmul.bf16.gmra.mxu1 %v1174_v25 }
 0x342   : > { %v1147_v26 = vpop.f32.mrf.mxu0 }
 0x343   : > { %v1148_v27 = vadd.f32 %v1147_v26, %v1054_v43 }
 0x345   : > { %v1166_v29 = vmax.f32 %v1148_v27, 0.0 }
 0x34a   : > { %v1149_v28 = vpop.f32.mrf.mxu0 }
 0x34b   : > { %v1150_v30 = vadd.f32 %v1149_v28, %v1054_v43 }
 0x34d   : > { %v1167_v31 = vmax.f32 %v1150_v30, 0.0 }
 0x34f   : > { %v1175_v34 = vpack.c.bf16 %v1167_v31, %v1166_v29 }
 0x351   : > { %1286 = vmatmul.bf16.gmra.mxu1 %v1175_v34 }
 0x358   : > { %v1252_v32 = vpop.f32.mrf.mxu1 }
 0x359   : > { %v1253_v38 = vadd.f32 %v1252_v32, %v1194_v37 }
 0x35b   : > { %1293 = vst.msk [vmem:[%s2006_s16] sm:$0xff] %vm1292_vm2, %v1253_v38 }
 0x360   : > { %v1254_v40 = vpop.f32.mrf.mxu1 }
 0x361   : > { %v1255_v41 = vadd.f32 %v1254_v40, %v1194_v37 }
 0x363   : > { %1294 = vst.msk [vmem:[%s2006_s16 + $0x8] sm:$0xff] %vm1292_vm2, %v1255_v41 }
 0x368   : > { %v1257_v42 = vpop.f32.mrf.mxu1 }
 0x369   : > { %v1258_v43 = vadd.f32 %v1257_v42, %v1194_v37 }
 0x36b   : > { %1295 = vst.msk [vmem:[%s2006_s16 + $0x10] sm:$0xff] %vm1292_vm2, %v1258_v43 }
 0x370   : > { %v1259_v44 = vpop.f32.mrf.mxu1 }
 0x371   : > { %v1260_v36 = vadd.f32 %v1259_v44, %v1194_v37 }
 0x373   : > { %1296 = vst.msk [vmem:[%s2006_s16 + $0x18] sm:$0xff] %vm1292_vm2, %v1260_v36 }
 0x37e   : > { %v1262_v45 = vpop.f32.mrf.mxu1 }
 0x37f   : > { %v1263_v46 = vadd.f32 %v1262_v45, %v1194_v37 }
 0x381   : > { %1297 = vst.msk [vmem:[%s2006_s16 + $0x20] sm:$0xff] %vm1292_vm2, %v1263_v46 }
 0x386   : > { %v1264_v47 = vpop.f32.mrf.mxu1 }
 0x387   : > { %v1265_v48 = vadd.f32 %v1264_v47, %v1194_v37 }
 0x389   : > { %1298 = vst.msk [vmem:[%s2006_s16 + $0x28] sm:$0xff] %vm1292_vm2, %v1265_v48 }
 0x38e   : > { %v1267_v49 = vpop.f32.mrf.mxu1 }
 0x38f   : > { %v1268_v39 = vadd.f32 %v1267_v49, %v1194_v37 }
 0x391   : > { %1299 = vst.msk [vmem:[%s2006_s16 + $0x30] sm:$0xff] %vm1292_vm2, %v1268_v39 }
 0x396   : > { %v1269_v50 = vpop.f32.mrf.mxu1 }
 0x397   : > { %v1270_v51 = vadd.f32 %v1269_v50, %v1194_v37 }
 0x399   : > { %1300 = vst.msk [vmem:[%s2006_s16 + $0x38] sm:$0xff] %vm1292_vm2, %v1270_v51 }
 0x39e   : > { %v1272_v52 = vpop.f32.mrf.mxu1 }
 0x39f   : > { %v1273_v53 = vadd.f32 %v1272_v52, %v1194_v37 }
 0x3a1   : > { %1301 = vst.msk [vmem:[%s2006_s16 + $0x40] sm:$0xff] %vm1292_vm2, %v1273_v53 }
 0x3a6   : > { %v1274_v54 = vpop.f32.mrf.mxu1 }
 0x3a7   : > { %v1275_v55 = vadd.f32 %v1274_v54, %v1194_v37 }
 0x3a9   : > { %1302 = vst.msk [vmem:[%s2006_s16 + $0x48] sm:$0xff] %vm1292_vm2, %v1275_v55 }
 0x3ae   : > { %v1277_v56 = vpop.f32.mrf.mxu1 }
 0x3af   : > { %v1278_v57 = vadd.f32 %v1277_v56, %v1194_v37 }
 0x3b1   : > { %1303 = vst.msk [vmem:[%s2006_s16 + $0x50] sm:$0xff] %vm1292_vm2, %v1278_v57 }
 0x3b6   : > { %v1279_v58 = vpop.f32.mrf.mxu1 }
 0x3b7   : > { %v1280_v59 = vadd.f32 %v1279_v58, %v1194_v37 }
 0x3b9   : > { %1304 = vst.msk [vmem:[%s2006_s16 + $0x58] sm:$0xff] %vm1292_vm2, %v1280_v59 }
 0x3be   : > { %v1282_v60 = vpop.f32.mrf.mxu1 }
 0x3bf   : > { %v1283_v61 = vadd.f32 %v1282_v60, %v1194_v37 }
 0x3c1   : > { %1305 = vst.msk [vmem:[%s2006_s16 + $0x60] sm:$0xff] %vm1292_vm2, %v1283_v61 }
 0x3c6   : > { %v1284_v62 = vpop.f32.mrf.mxu1 }
 0x3c7   : > { %v1285_v63 = vadd.f32 %v1284_v62, %v1194_v37 }
 0x3c9   : > { %1306 = vst.msk [vmem:[%s2006_s16 + $0x68] sm:$0xff] %vm1292_vm2, %v1285_v63 }
 0x3ce   : > { %v1287_v0 = vpop.f32.mrf.mxu1 }
 0x3cf   : > { %v1288_v1 = vadd.f32 %v1287_v0, %v1194_v37 }
 0x3d1   : > { %1307 = vst.msk [vmem:[%s2006_s16 + $0x70] sm:$0xff] %vm1292_vm2, %v1288_v1 }
 0x3d6   : > { %v1289_v2 = vpop.f32.mrf.mxu1 }
 0x3d7   : > { %v1290_v3 = vadd.f32 %v1289_v2, %v1194_v37 }
 0x3d9   : > { %1308 = vst.msk [vmem:[%s2006_s16 + $0x78] sm:$0xff] %vm1292_vm2, %v1290_v3 }
 0x3da PF: > { %s24_s25 = sadd.s32 1, %s1684_s25  }
 0x3db   : > { %p21_p7 = scmp.ge.s32.totalorder %s24_s25, 4  }
 0x3dd   :  { %23 = sbr.rel (!%p21_p7) target bundleno = 1 (0x1), region = 107 }
 0x3e2   :  { %1331 = vsyncpa [#allocation3], 1 }
 0x3e3   :  { %1333 = vsyncpa [#allocation3 + $0x1], 1 }

</bundles_post_ra>
